<compile_context>
chip_gen: v5e
topology: v5e:2x2
jax: 0.10.0
libtpu: 0.0.40
codegen_flags: <defaults>
</compile_context>

<pallas_src>
import numpy as np

import jax
import jax.numpy as jnp
from jax.experimental import pallas as pl
from jax.experimental.pallas import tpu as pltpu

BN_EPS = 1e-5


# ----------------------------------------------------------------------------- kernel
def attention_gate_kernel(g_ref, x_ref, bdg_ref, bg_ref, ah_ref, rw_ref,
                          bdx_ref, bx_ref, ppsi_ref, bpsi_ref, egate_ref, o_ref):
    bf16, f32 = jnp.bfloat16, jnp.float32

    g = g_ref[0]          # (Hg, Wg*F_g)   bf16, lane-dense
    x = x_ref[0]          # (Hx, Wx*F_l)   f32,  lane-dense

    # ---- W_g : 1x1 conv + folded BatchNorm, one block-diagonal matmul ----
    g_out = jnp.dot(g, bdg_ref[...],
                    preferred_element_type=f32) + bg_ref[...]          # (Hg, Wg*F_int)

    # ---- bilinear upsample to (Hx, Wx): two matmuls (separable interp) ----
    gh = jnp.dot(ah_ref[...], g_out.astype(bf16),
                 preferred_element_type=f32)                           # (Hx, Wg*F_int)
    g_up = jnp.dot(gh.astype(bf16), rw_ref[...],
                   preferred_element_type=f32)                         # (Hx, Wx*F_int)

    # ---- W_x : 1x1 conv + folded BatchNorm ----
    x_out = jnp.dot(x.astype(bf16), bdx_ref[...],
                    preferred_element_type=f32) + bx_ref[...]          # (Hx, Wx*F_int)

    # ---- ReLU(g_up + x_out) ----
    r = jnp.maximum(g_up + x_out, 0.0)                                 # (Hx, Wx*F_int)

    # ---- psi : 1x1 conv to 1 channel + folded BN + sigmoid ----
    a = jnp.dot(r.astype(bf16), ppsi_ref[...],
                preferred_element_type=f32) + bpsi_ref[...]            # (Hx, Wx)
    alpha = 1.0 / (1.0 + jnp.exp(-a))

    # ---- gate: broadcast alpha over the F_l channels packed along lanes ----
    # (tiny matmul against a 0/1 expansion matrix keeps everything 2-D / lane-dense)
    alpha_exp = jnp.dot(alpha.astype(bf16), egate_ref[...],
                        preferred_element_type=f32)                    # (Hx, Wx*F_l)
    o_ref[0] = (x * alpha_exp).astype(o_ref.dtype)


# ----------------------------------------------------------------------------- helpers
def _bilinear_matrix(n_out, n_in):
    """Row-stochastic matrix implementing F.interpolate(mode='bilinear',
    align_corners=False) along one spatial axis (PyTorch half-pixel formula)."""
    if n_out == n_in:
        return np.eye(n_out, dtype=np.float32)
    A = np.zeros((n_out, n_in), dtype=np.float32)
    scale = n_in / n_out
    for i in range(n_out):
        src = max((i + 0.5) * scale - 0.5, 0.0)
        p0 = min(int(np.floor(src)), n_in - 1)
        p1 = min(p0 + 1, n_in - 1)
        frac = src - p0
        A[i, p0] += 1.0 - frac
        A[i, p1] += frac
    return A


def _fold_conv1x1_bn(w, b, gamma, beta, mean, var, eps=BN_EPS):
    """Fold eval-mode BatchNorm into a 1x1 conv.
    w: (Cout, Cin, 1, 1) torch layout -> ((Cin, Cout) weight, (Cout,) bias)."""
    scale = gamma / jnp.sqrt(var + eps)
    w_eff = (w[:, :, 0, 0] * scale[:, None]).T
    b_eff = (b - mean) * scale + beta
    return w_eff, b_eff


# ----------------------------------------------------------------------------- wrapper
def attention_gate_forward(g_nchw, x_nchw, params):
    """g: (N, F_g, Hg, Wg), x: (N, F_l, Hx, Wx)  ->  (N, F_l, Hx, Wx)."""
    N, F_g, Hg, Wg = g_nchw.shape
    N2, F_l, Hx, Wx = x_nchw.shape
    assert N == N2
    F_int = params["wg_w"].shape[0]
    f32, bf16 = jnp.float32, jnp.bfloat16

    # fold eval-mode BatchNorm into each 1x1 conv
    wg_eff, bg_eff = _fold_conv1x1_bn(params["wg_w"], params["wg_b"], params["bng_g"],
                                      params["bng_b"], params["bng_m"], params["bng_v"])
    wx_eff, bx_eff = _fold_conv1x1_bn(params["wx_w"], params["wx_b"], params["bnx_g"],
                                      params["bnx_b"], params["bnx_m"], params["bnx_v"])
    wp_eff, bp_eff = _fold_conv1x1_bn(params["wp_w"], params["wp_b"], params["bnp_g"],
                                      params["bnp_b"], params["bnp_m"], params["bnp_v"])

    # structured matrices: one lane-dense matmul per kernel step
    A_h = jnp.asarray(_bilinear_matrix(Hx, Hg))                          # (Hx, Hg)
    A_w = _bilinear_matrix(Wx, Wg)                                       # (Wx, Wg)
    bdg = jnp.kron(jnp.eye(Wg, dtype=f32), wg_eff)                       # (Wg*F_g,  Wg*F_int)
    bdx = jnp.kron(jnp.eye(Wx, dtype=f32), wx_eff)                       # (Wx*F_l,  Wx*F_int)
    rw = jnp.kron(jnp.asarray(A_w.T), jnp.eye(F_int, dtype=f32))         # (Wg*F_int, Wx*F_int)
    ppsi = jnp.kron(jnp.eye(Wx, dtype=f32), wp_eff)                      # (Wx*F_int, Wx)
    egate = jnp.kron(jnp.eye(Wx, dtype=f32), jnp.ones((1, F_l), f32))    # (Wx, Wx*F_l)

    bg_row = jnp.tile(bg_eff, Wg)[None, :]                               # (1, Wg*F_int)
    bx_row = jnp.tile(bx_eff, Wx)[None, :]                               # (1, Wx*F_int)
    bp_row = jnp.tile(bp_eff, Wx)[None, :]                               # (1, Wx)

    # NCHW -> lane-dense (N, H, W*C); bf16 matmul operands, f32 where exactness matters
    g_ld = jnp.transpose(g_nchw, (0, 2, 3, 1)).reshape(N, Hg, Wg * F_g).astype(bf16)
    x_ld = jnp.transpose(x_nchw, (0, 2, 3, 1)).reshape(N, Hx, Wx * F_l).astype(f32)

    out_ld = pl.pallas_call(
        attention_gate_kernel,
        out_shape=jax.ShapeDtypeStruct((N, Hx, Wx * F_l), f32),
        grid_spec=pltpu.PrefetchScalarGridSpec(
            num_scalar_prefetch=0,
            grid=(N,),
            in_specs=[
                pl.BlockSpec((1, Hg, Wg * F_g), lambda n: (n, 0, 0)),       # g
                pl.BlockSpec((1, Hx, Wx * F_l), lambda n: (n, 0, 0)),       # x
                pl.BlockSpec((Wg * F_g, Wg * F_int), lambda n: (0, 0)),     # W_g block-diag
                pl.BlockSpec((1, Wg * F_int), lambda n: (0, 0)),            # W_g bias row
                pl.BlockSpec((Hx, Hg), lambda n: (0, 0)),                   # H interp
                pl.BlockSpec((Wg * F_int, Wx * F_int), lambda n: (0, 0)),   # W interp (kron I)
                pl.BlockSpec((Wx * F_l, Wx * F_int), lambda n: (0, 0)),     # W_x block-diag
                pl.BlockSpec((1, Wx * F_int), lambda n: (0, 0)),            # W_x bias row
                pl.BlockSpec((Wx * F_int, Wx), lambda n: (0, 0)),           # psi block-diag
                pl.BlockSpec((1, Wx), lambda n: (0, 0)),                    # psi bias row
                pl.BlockSpec((Wx, Wx * F_l), lambda n: (0, 0)),             # alpha expansion
            ],
            out_specs=pl.BlockSpec((1, Hx, Wx * F_l), lambda n: (n, 0, 0)),
        ),
        compiler_params=pltpu.CompilerParams(
            dimension_semantics=("parallel",),
            vmem_limit_bytes=32 * 1024 * 1024,
        ),
    )(
        g_ld, x_ld,
        bdg.astype(bf16), bg_row.astype(f32),
        A_h.astype(bf16), rw.astype(bf16),
        bdx.astype(bf16), bx_row.astype(f32),
        ppsi.astype(bf16), bp_row.astype(f32),
        egate.astype(bf16),
    )

    # (N, Hx, Wx*F_l) -> NCHW
    return jnp.transpose(out_ld.reshape(N, Hx, Wx, F_l), (0, 3, 1, 2))


# ----------------------------------------------------------------------------- reference
def attention_gate_reference(g, x, params):
    """Pure-JAX f32 eval-mode reference (NCHW), for correctness check."""
    hp = jax.lax.Precision.HIGHEST

    def conv_bn(z, w, b, gamma, beta, mean, var, eps=BN_EPS):
        y = jnp.einsum("nchw,oc->nohw", z, w[:, :, 0, 0], precision=hp)
        y = y + b[None, :, None, None]
        scale = gamma / jnp.sqrt(var + eps)
        return (y - mean[None, :, None, None]) * scale[None, :, None, None] \
            + beta[None, :, None, None]

    g_out = conv_bn(g, params["wg_w"], params["wg_b"], params["bng_g"],
                    params["bng_b"], params["bng_m"], params["bng_v"])
    x_out = conv_bn(x, params["wx_w"], params["wx_b"], params["bnx_g"],
                    params["bnx_b"], params["bnx_m"], params["bnx_v"])
    A_h = jnp.asarray(_bilinear_matrix(x.shape[2], g.shape[2]))
    A_w = jnp.asarray(_bilinear_matrix(x.shape[3], g.shape[3]))
    g_up = jnp.einsum("Hh,nchw->ncHw", A_h, g_out, precision=hp)
    g_up = jnp.einsum("Ww,ncHw->ncHW", A_w, g_up, precision=hp)
    r = jnp.maximum(g_up + x_out, 0.0)
    a = conv_bn(r, params["wp_w"], params["wp_b"], params["bnp_g"],
                params["bnp_b"], params["bnp_m"], params["bnp_v"])
    return x * jax.nn.sigmoid(a)


# ----------------------------------------------------------------------------- demo
if __name__ == "__main__":
    key = jax.random.PRNGKey(0)
    ks = iter(jax.random.split(key, 32))

    N, F_g, F_l, F_int = 2, 16, 8, 8
    Hg, Wg, Hx, Wx = 8, 8, 16, 16          # gating signal at half resolution

    g = jax.random.normal(next(ks), (N, F_g, Hg, Wg), jnp.float32)
    x = jax.random.normal(next(ks), (N, F_l, Hx, Wx), jnp.float32)

    def conv_bn_params(cout, cin):
        return {
            "w": 0.2 * jax.random.normal(next(ks), (cout, cin, 1, 1), jnp.float32),
            "b": 0.1 * jax.random.normal(next(ks), (cout,), jnp.float32),
            "gm": 1.0 + 0.1 * jax.random.normal(next(ks), (cout,), jnp.float32),
            "bt": 0.1 * jax.random.normal(next(ks), (cout,), jnp.float32),
            "mn": 0.1 * jax.random.normal(next(ks), (cout,), jnp.float32),
            "vr": 1.0 + 0.1 * jnp.abs(jax.random.normal(next(ks), (cout,), jnp.float32)),
        }

    pg, px, pp = conv_bn_params(F_int, F_g), conv_bn_params(F_int, F_l), conv_bn_params(1, F_int)
    params = {
        "wg_w": pg["w"], "wg_b": pg["b"], "bng_g": pg["gm"], "bng_b": pg["bt"],
        "bng_m": pg["mn"], "bng_v": pg["vr"],
        "wx_w": px["w"], "wx_b": px["b"], "bnx_g": px["gm"], "bnx_b": px["bt"],
        "bnx_m": px["mn"], "bnx_v": px["vr"],
        "wp_w": pp["w"], "wp_b": pp["b"], "bnp_g": pp["gm"], "bnp_b": pp["bt"],
        "bnp_m": pp["mn"], "bnp_v": pp["vr"],
    }

    out = jax.jit(attention_gate_forward)(g, x, params)
    jax.block_until_ready(out)
    assert out.shape == (N, F_l, Hx, Wx)

    ref = attention_gate_reference(g, x, params)
    err = float(jnp.max(jnp.abs(out - ref)))
    assert err < 5e-2, f"max abs err too large: {err}"

    print("KERNEL_OK")
</pallas_src>

<mosaic_0001>
module attributes {stable_mosaic.version = 11 : i64} {
  func.func @attention_gate_kernel(%arg0: i32, %arg1: memref<1x8x128xbf16, #tpu.memory_space<vmem>>, %arg2: memref<1x16x128xf32, #tpu.memory_space<vmem>>, %arg3: memref<128x64xbf16, #tpu.memory_space<vmem>>, %arg4: memref<1x64xf32, #tpu.memory_space<vmem>>, %arg5: memref<16x8xbf16, #tpu.memory_space<vmem>>, %arg6: memref<64x128xbf16, #tpu.memory_space<vmem>>, %arg7: memref<128x128xbf16, #tpu.memory_space<vmem>>, %arg8: memref<1x128xf32, #tpu.memory_space<vmem>>, %arg9: memref<128x16xbf16, #tpu.memory_space<vmem>>, %arg10: memref<1x16xf32, #tpu.memory_space<vmem>>, %arg11: memref<16x128xbf16, #tpu.memory_space<vmem>>, %arg12: memref<1x16x128xf32, #tpu.memory_space<vmem>>) attributes {dimension_semantics = [#tpu.dimension_semantics<parallel>], iteration_bounds = array<i64: 2>, scalar_prefetch = 0 : i64, scratch_operands = 0 : i64, tpu.core_type = #tpu.core_type<tc>, window_params = [{transform_indices = @transform_0, window_bounds = array<i64: 1, 8, 128>}, {transform_indices = @transform_1, window_bounds = array<i64: 1, 16, 128>}, {pipeline_mode = #tpu.pipeline_mode<synchronous>, transform_indices = @transform_2, window_bounds = array<i64: 128, 64>}, {pipeline_mode = #tpu.pipeline_mode<synchronous>, transform_indices = @transform_3, window_bounds = array<i64: 1, 64>}, {pipeline_mode = #tpu.pipeline_mode<synchronous>, transform_indices = @transform_4, window_bounds = array<i64: 16, 8>}, {pipeline_mode = #tpu.pipeline_mode<synchronous>, transform_indices = @transform_5, window_bounds = array<i64: 64, 128>}, {pipeline_mode = #tpu.pipeline_mode<synchronous>, transform_indices = @transform_6, window_bounds = array<i64: 128, 128>}, {pipeline_mode = #tpu.pipeline_mode<synchronous>, transform_indices = @transform_7, window_bounds = array<i64: 1, 128>}, {pipeline_mode = #tpu.pipeline_mode<synchronous>, transform_indices = @transform_8, window_bounds = array<i64: 128, 16>}, {pipeline_mode = #tpu.pipeline_mode<synchronous>, transform_indices = @transform_9, window_bounds = array<i64: 1, 16>}, {pipeline_mode = #tpu.pipeline_mode<synchronous>, transform_indices = @transform_10, window_bounds = array<i64: 16, 128>}, {transform_indices = @transform_11, window_bounds = array<i64: 1, 16, 128>}]} {
    %c0 = arith.constant 0 : index
    %c0_0 = arith.constant 0 : index
    %c0_1 = arith.constant 0 : index
    %0 = vector.load %arg1[%c0, %c0_0, %c0_1] : memref<1x8x128xbf16, #tpu.memory_space<vmem>>, vector<1x8x128xbf16>
    %1 = vector.shape_cast %0 : vector<1x8x128xbf16> to vector<8x128xbf16>
    %c0_2 = arith.constant 0 : index
    %c0_3 = arith.constant 0 : index
    %c0_4 = arith.constant 0 : index
    %2 = vector.load %arg2[%c0_2, %c0_3, %c0_4] : memref<1x16x128xf32, #tpu.memory_space<vmem>>, vector<1x16x128xf32>
    %3 = vector.shape_cast %2 : vector<1x16x128xf32> to vector<16x128xf32>
    %c0_5 = arith.constant 0 : index
    %c0_6 = arith.constant 0 : index
    %4 = vector.load %arg3[%c0_5, %c0_6] : memref<128x64xbf16, #tpu.memory_space<vmem>>, vector<128x64xbf16>
    %cst = arith.constant dense<0.000000e+00> : vector<8x64xf32>
    %5 = tpu.matmul %1, %4, %cst {dimension_numbers = #tpu.dot_dimension_numbers<[1], [0], [0], [1], [0, 0, 1, 1], [], []>} : vector<8x128xbf16>, vector<128x64xbf16>, vector<8x64xf32> -> vector<8x64xf32>
    %c0_7 = arith.constant 0 : index
    %c0_8 = arith.constant 0 : index
    %6 = vector.load %arg4[%c0_7, %c0_8] : memref<1x64xf32, #tpu.memory_space<vmem>>, vector<1x64xf32>
    %7 = vector.broadcast %6 : vector<1x64xf32> to vector<8x64xf32>
    %8 = arith.addf %5, %7 : vector<8x64xf32>
    %c0_9 = arith.constant 0 : index
    %c0_10 = arith.constant 0 : index
    %9 = vector.load %arg5[%c0_9, %c0_10] : memref<16x8xbf16, #tpu.memory_space<vmem>>, vector<16x8xbf16>
    %10 = arith.truncf %8 : vector<8x64xf32> to vector<8x64xbf16>
    %cst_11 = arith.constant dense<0.000000e+00> : vector<16x64xf32>
    %11 = tpu.matmul %9, %10, %cst_11 {dimension_numbers = #tpu.dot_dimension_numbers<[1], [0], [0], [1], [0, 0, 1, 1], [], []>} : vector<16x8xbf16>, vector<8x64xbf16>, vector<16x64xf32> -> vector<16x64xf32>
    %12 = arith.truncf %11 : vector<16x64xf32> to vector<16x64xbf16>
    %c0_12 = arith.constant 0 : index
    %c0_13 = arith.constant 0 : index
    %13 = vector.load %arg6[%c0_12, %c0_13] : memref<64x128xbf16, #tpu.memory_space<vmem>>, vector<64x128xbf16>
    %cst_14 = arith.constant dense<0.000000e+00> : vector<16x128xf32>
    %14 = tpu.matmul %12, %13, %cst_14 {dimension_numbers = #tpu.dot_dimension_numbers<[1], [0], [0], [1], [0, 0, 1, 1], [], []>} : vector<16x64xbf16>, vector<64x128xbf16>, vector<16x128xf32> -> vector<16x128xf32>
    %15 = arith.truncf %3 : vector<16x128xf32> to vector<16x128xbf16>
    %c0_15 = arith.constant 0 : index
    %c0_16 = arith.constant 0 : index
    %16 = vector.load %arg7[%c0_15, %c0_16] : memref<128x128xbf16, #tpu.memory_space<vmem>>, vector<128x128xbf16>
    %cst_17 = arith.constant dense<0.000000e+00> : vector<16x128xf32>
    %17 = tpu.matmul %15, %16, %cst_17 {dimension_numbers = #tpu.dot_dimension_numbers<[1], [0], [0], [1], [0, 0, 1, 1], [], []>} : vector<16x128xbf16>, vector<128x128xbf16>, vector<16x128xf32> -> vector<16x128xf32>
    %c0_18 = arith.constant 0 : index
    %c0_19 = arith.constant 0 : index
    %18 = vector.load %arg8[%c0_18, %c0_19] : memref<1x128xf32, #tpu.memory_space<vmem>>, vector<1x128xf32>
    %19 = vector.broadcast %18 : vector<1x128xf32> to vector<16x128xf32>
    %20 = arith.addf %17, %19 : vector<16x128xf32>
    %21 = arith.addf %14, %20 : vector<16x128xf32>
    %cst_20 = arith.constant 0.000000e+00 : f32
    %22 = vector.broadcast %cst_20 : f32 to vector<16x128xf32>
    %23 = arith.maximumf %21, %22 : vector<16x128xf32>
    %24 = arith.truncf %23 : vector<16x128xf32> to vector<16x128xbf16>
    %c0_21 = arith.constant 0 : index
    %c0_22 = arith.constant 0 : index
    %25 = vector.load %arg9[%c0_21, %c0_22] : memref<128x16xbf16, #tpu.memory_space<vmem>>, vector<128x16xbf16>
    %cst_23 = arith.constant dense<0.000000e+00> : vector<16x16xf32>
    %26 = tpu.matmul %24, %25, %cst_23 {dimension_numbers = #tpu.dot_dimension_numbers<[1], [0], [0], [1], [0, 0, 1, 1], [], []>} : vector<16x128xbf16>, vector<128x16xbf16>, vector<16x16xf32> -> vector<16x16xf32>
    %c0_24 = arith.constant 0 : index
    %c0_25 = arith.constant 0 : index
    %27 = vector.load %arg10[%c0_24, %c0_25] : memref<1x16xf32, #tpu.memory_space<vmem>>, vector<1x16xf32>
    %28 = vector.broadcast %27 : vector<1x16xf32> to vector<16x16xf32>
    %29 = arith.addf %26, %28 : vector<16x16xf32>
    %cst_26 = arith.constant 0.000000e+00 : f32
    %30 = vector.broadcast %cst_26 : f32 to vector<16x16xf32>
    %31 = arith.subf %30, %29 : vector<16x16xf32>
    %32 = math.exp %31 : vector<16x16xf32>
    %cst_27 = arith.constant 1.000000e+00 : f32
    %33 = vector.broadcast %cst_27 : f32 to vector<16x16xf32>
    %34 = arith.addf %33, %32 : vector<16x16xf32>
    %cst_28 = arith.constant 1.000000e+00 : f32
    %35 = vector.broadcast %cst_28 : f32 to vector<16x16xf32>
    %36 = arith.divf %35, %34 : vector<16x16xf32>
    %37 = arith.truncf %36 : vector<16x16xf32> to vector<16x16xbf16>
    %c0_29 = arith.constant 0 : index
    %c0_30 = arith.constant 0 : index
    %38 = vector.load %arg11[%c0_29, %c0_30] : memref<16x128xbf16, #tpu.memory_space<vmem>>, vector<16x128xbf16>
    %cst_31 = arith.constant dense<0.000000e+00> : vector<16x128xf32>
    %39 = tpu.matmul %37, %38, %cst_31 {dimension_numbers = #tpu.dot_dimension_numbers<[1], [0], [0], [1], [0, 0, 1, 1], [], []>} : vector<16x16xbf16>, vector<16x128xbf16>, vector<16x128xf32> -> vector<16x128xf32>
    %40 = arith.mulf %3, %39 : vector<16x128xf32>
    %c0_32 = arith.constant 0 : index
    %c0_33 = arith.constant 0 : index
    %c0_34 = arith.constant 0 : index
    %41 = vector.load %arg12[%c0_32, %c0_33, %c0_34] : memref<1x16x128xf32, #tpu.memory_space<vmem>>, vector<1x16x128xf32>
    %42 = vector.shape_cast %41 : vector<1x16x128xf32> to vector<16x128xf32>
    %43 = vector.shape_cast %40 : vector<16x128xf32> to vector<1x16x128xf32>
    tpu.vector_store %arg12[%c0_32, %c0_33, %c0_34], %43 {strides = array<i32>} : memref<1x16x128xf32, #tpu.memory_space<vmem>>, vector<1x16x128xf32>,
    return
  }
  func.func @transform_0(%arg0: i32) -> (i32, i32, i32) {
    %c0_i32 = arith.constant 0 : i32
    %c0_i32_0 = arith.constant 0 : i32
    %c0_i32_1 = arith.constant 0 : i32
    return %arg0, %c0_i32, %c0_i32_0 : i32, i32, i32
  }
  func.func @transform_1(%arg0: i32) -> (i32, i32, i32) {
    %c0_i32 = arith.constant 0 : i32
    %c0_i32_0 = arith.constant 0 : i32
    %c0_i32_1 = arith.constant 0 : i32
    return %arg0, %c0_i32, %c0_i32_0 : i32, i32, i32
  }
  func.func @transform_2(%arg0: i32) -> (i32, i32) {
    %c0_i32 = arith.constant 0 : i32
    %c0_i32_0 = arith.constant 0 : i32
    %c0_i32_1 = arith.constant 0 : i32
    return %c0_i32, %c0_i32_0 : i32, i32
  }
  func.func @transform_3(%arg0: i32) -> (i32, i32) {
    %c0_i32 = arith.constant 0 : i32
    %c0_i32_0 = arith.constant 0 : i32
    %c0_i32_1 = arith.constant 0 : i32
    return %c0_i32, %c0_i32_0 : i32, i32
  }
  func.func @transform_4(%arg0: i32) -> (i32, i32) {
    %c0_i32 = arith.constant 0 : i32
    %c0_i32_0 = arith.constant 0 : i32
    %c0_i32_1 = arith.constant 0 : i32
    return %c0_i32, %c0_i32_0 : i32, i32
  }
  func.func @transform_5(%arg0: i32) -> (i32, i32) {
    %c0_i32 = arith.constant 0 : i32
    %c0_i32_0 = arith.constant 0 : i32
    %c0_i32_1 = arith.constant 0 : i32
    return %c0_i32, %c0_i32_0 : i32, i32
  }
  func.func @transform_6(%arg0: i32) -> (i32, i32) {
    %c0_i32 = arith.constant 0 : i32
    %c0_i32_0 = arith.constant 0 : i32
    %c0_i32_1 = arith.constant 0 : i32
    return %c0_i32, %c0_i32_0 : i32, i32
  }
  func.func @transform_7(%arg0: i32) -> (i32, i32) {
    %c0_i32 = arith.constant 0 : i32
    %c0_i32_0 = arith.constant 0 : i32
    %c0_i32_1 = arith.constant 0 : i32
    return %c0_i32, %c0_i32_0 : i32, i32
  }
  func.func @transform_8(%arg0: i32) -> (i32, i32) {
    %c0_i32 = arith.constant 0 : i32
    %c0_i32_0 = arith.constant 0 : i32
    %c0_i32_1 = arith.constant 0 : i32
    return %c0_i32, %c0_i32_0 : i32, i32
  }
  func.func @transform_9(%arg0: i32) -> (i32, i32) {
    %c0_i32 = arith.constant 0 : i32
    %c0_i32_0 = arith.constant 0 : i32
    %c0_i32_1 = arith.constant 0 : i32
    return %c0_i32, %c0_i32_0 : i32, i32
  }
  func.func @transform_10(%arg0: i32) -> (i32, i32) {
    %c0_i32 = arith.constant 0 : i32
    %c0_i32_0 = arith.constant 0 : i32
    %c0_i32_1 = arith.constant 0 : i32
    return %c0_i32, %c0_i32_0 : i32, i32
  }
  func.func @transform_11(%arg0: i32) -> (i32, i32, i32) {
    %c0_i32 = arith.constant 0 : i32
    %c0_i32_0 = arith.constant 0 : i32
    %c0_i32_1 = arith.constant 0 : i32
    return %arg0, %c0_i32, %c0_i32_0 : i32, i32, i32
  }
}

</mosaic_0001>

<bundles_post_ra>
// kernel: tile.24
= control target key start
LH: loop header
LB: loop body
LE: loop exit
PB: predicated region body
PF: predicated region fallthrough
CT: control target
= control target key end

     0   :  { %s131_s10 = smov 120   ;;  %s132_s11 = smov 104   ;;  %vm3_vm0 = vcmask 64512   ;;  %vm9_vm1 = vcmask 1048512   ;;  %vm15_vm2 = vcmask 982912   ;;  %vm21_vm3 = vcmask 917312   ;;  %s207_s0 = inlined_call_operand.vmem [shape: f32[16,8], index: 0, kind: input, shape index: {}]   ;;  %s208_s1 = inlined_call_operand.vmem [shape: f32[1,128], index: 1, kind: output, shape index: {}]  }
   0x1   :  { %v101_v0 = vld [vmem:[%s207_s0 + $0xf] sm:$0x1]   ;;  %v103_v1 = vld [vmem:[%s207_s0 + $0xd] sm:$0x1]   ;;  %v105_v2 = vld [vmem:[%s207_s0 + $0xb] sm:$0x1]  }
   0x2   :  { %7 = vrot.lane.b32.xlu0 %v101_v0, %s131_s10  ;;  %19 = vrot.lane.b32.xlu1 %v103_v1, %s132_s11  ;;  %s133_s14 = smov 88   ;;  %v102_v3 = vld [vmem:[%s207_s0 + $0xe] sm:$0x1]   ;;  %v104_v4 = vld [vmem:[%s207_s0 + $0xc] sm:$0x1]   ;;  %s134_s19 = smov 112  }
   0x3   :  { %31 = vrot.lane.b32.xlu2 %v105_v2, %s133_s14  ;;  %s135_s20 = smov 96   ;;  %v106_v5 = vld [vmem:[%s207_s0 + $0xa] sm:$0x1]   ;;  %s136_s23 = smov 80   ;;  %v107_v6 = vld [vmem:[%s207_s0 + $0x9] sm:$0x1]  }
   0x4   :  { %v108_v7 = vld [vmem:[%s207_s0 + $0x8] sm:$0x1]   ;;  %s137_s28 = smov 72   ;;  %s138_s29 = smov 64   ;;  %v109_v8 = vld [vmem:[%s207_s0 + $0x7] sm:$0x1]  }
   0x5   :  { %s139_s3 = smov 56   ;;  %v110_v9 = vld [vmem:[%s207_s0 + $0x6] sm:$0x1]   ;;  %v111_v10 = vld [vmem:[%s207_s0 + $0x5] sm:$0x1]   ;;  %s140_s8 = smov 48  }
   0x6   :  { %s141_s9 = smov 40   ;;  %v112_v11 = vld [vmem:[%s207_s0 + $0x4] sm:$0x1]   ;;  %s142_s12 = smov 32   ;;  %v113_v12 = vld [vmem:[%s207_s0 + $0x3] sm:$0x1]  }
   0x7   :  { %v114_v13 = vld [vmem:[%s207_s0 + $0x2] sm:$0x1]   ;;  %s143_s17 = smov 24   ;;  %s144_s18 = smov 16   ;;  %v115_v14 = vld [vmem:[%s207_s0 + $0x1] sm:$0x1]  }
   0x8   :  { %s145_s21 = smov 8   ;;  %v2_v15 = vld [vmem:[%s207_s0] sm:$0x1]   ;;  %vm27_vm4 = vcmask 851712   ;;  %vm33_vm5 = vcmask 786112   ;;  %vm39_vm6 = vcmask 720512  }
   0x9   :  { %4 = vst.msk [vmem:[#allocation0] sm:$0x1] %vm3_vm0, %v2_v15   ;;  %vm45_vm7 = vcmask 654912   ;;  %vm51_vm8 = vcmask 589312   ;;  %vm57_vm9 = vcmask 523712   ;;  %vm63_vm10 = vcmask 458112  }
   0xa   :  { %13 = vrot.lane.b32.xlu0 %v102_v3, %s134_s19  ;;  %25 = vrot.lane.b32.xlu1 %v104_v4, %s135_s20  ;;  %vm69_vm11 = vcmask 392512   ;;  %vm75_vm12 = vcmask 326912   ;;  %vm81_vm13 = vcmask 261312   ;;  %vm87_vm14 = vcmask 195712  }
   0xb   :  { %37 = vrot.lane.b32.xlu2 %v106_v5, %s136_s23  ;;  %vm93_vm15 = vcmask 130112  }
  0x12   :  { %43 = vrot.lane.b32.xlu0 %v107_v6, %s137_s28  ;;  %49 = vrot.lane.b32.xlu1 %v108_v7, %s138_s29 }
  0x13   :  { %55 = vrot.lane.b32.xlu2 %v109_v8, %s139_s3 }
  0x1a   :  { %61 = vrot.lane.b32.xlu0 %v110_v9, %s140_s8  ;;  %67 = vrot.lane.b32.xlu1 %v111_v10, %s141_s9 }
  0x1b   :  { %73 = vrot.lane.b32.xlu2 %v112_v11, %s142_s12 }
  0x22   :  { %79 = vrot.lane.b32.xlu0 %v113_v12, %s143_s17  ;;  %85 = vrot.lane.b32.xlu1 %v114_v13, %s144_s18 }
  0x23   :  { %91 = vrot.lane.b32.xlu2 %v115_v14, %s145_s21 }
  0x5d   :  { %v32_v16 = vpop.permute.xlu2 %31  }
  0x65   :  { %v38_v17 = vpop.permute.xlu2 %37  }
  0x6d   :  { %v56_v18 = vpop.permute.xlu2 %55  }
  0x74   :  { %v8_v19 = vpop.permute.xlu0 %7   ;;  %v20_v20 = vpop.permute.xlu1 %19  }
  0x75   :  { %10 = vst.msk [vmem:[#allocation0] sm:$0x1] %vm9_vm1, %v8_v19   ;;  %v74_v21 = vpop.permute.xlu2 %73  }
  0x7c   :  { %v14_v22 = vpop.permute.xlu0 %13   ;;  %v26_v23 = vpop.permute.xlu1 %25  }
  0x7d   :  { %16 = vst.msk [vmem:[#allocation0] sm:$0x1] %vm15_vm2, %v14_v22   ;;  %v92_v24 = vpop.permute.xlu2 %91  }
  0x7e   :  { %22 = vst.msk [vmem:[#allocation0] sm:$0x1] %vm21_vm3, %v20_v20  }
  0x7f   :  { %28 = vst.msk [vmem:[#allocation0] sm:$0x1] %vm27_vm4, %v26_v23  }
  0x80   :  { %34 = vst.msk [vmem:[#allocation0] sm:$0x1] %vm33_vm5, %v32_v16  }
  0x81   :  { %40 = vst.msk [vmem:[#allocation0] sm:$0x1] %vm39_vm6, %v38_v17  }
  0x84   :  { %v44_v25 = vpop.permute.xlu0 %43   ;;  %v50_v26 = vpop.permute.xlu1 %49  }
  0x85   :  { %46 = vst.msk [vmem:[#allocation0] sm:$0x1] %vm45_vm7, %v44_v25  }
  0x86   :  { %52 = vst.msk [vmem:[#allocation0] sm:$0x1] %vm51_vm8, %v50_v26  }
  0x87   :  { %58 = vst.msk [vmem:[#allocation0] sm:$0x1] %vm57_vm9, %v56_v18  }
  0x8c   :  { %v62_v27 = vpop.permute.xlu0 %61   ;;  %v68_v28 = vpop.permute.xlu1 %67  }
  0x8d   :  { %64 = vst.msk [vmem:[#allocation0] sm:$0x1] %vm63_vm10, %v62_v27  }
  0x8e   :  { %70 = vst.msk [vmem:[#allocation0] sm:$0x1] %vm69_vm11, %v68_v28  }
  0x8f   :  { %76 = vst.msk [vmem:[#allocation0] sm:$0x1] %vm75_vm12, %v74_v21  }
  0x94   :  { %v80_v29 = vpop.permute.xlu0 %79   ;;  %v86_v30 = vpop.permute.xlu1 %85  }
  0x95   :  { %82 = vst.msk [vmem:[#allocation0] sm:$0x1] %vm81_vm13, %v80_v29  }
  0x96   :  { %88 = vst.msk [vmem:[#allocation0] sm:$0x1] %vm87_vm14, %v86_v30  }
  0x97   :  { %94 = vst.msk [vmem:[#allocation0] sm:$0x1] %vm93_vm15, %v92_v24  }
  0x9e   :  { %v97_v31 = vld [vmem:[#allocation0] sm:$0x1] }
  0x9f   :  { %100 = vst [vmem:[%s208_s1] sm:$0x1] %v97_v31 }

// kernel: tile.18
= control target key start
LH: loop header
LB: loop body
LE: loop exit
PB: predicated region body
PF: predicated region fallthrough
CT: control target
= control target key end

     0   :  { %s22_s0 = inlined_call_operand.vmem [shape: f32[8], index: 0, kind: input, shape index: {}]   ;;  %s23_s1 = inlined_call_operand.vmem [shape: f32[8,8], index: 1, kind: output, shape index: {}]  }
   0x1   :  { %v4_v0 = vld [vmem:[%s22_s0] ss:$0 sm:$0xff] }
   0x2   :  { %5 = vst [vmem:[%s23_s1] sm:$0xff] %v4_v0 }

// kernel: tile.19
= control target key start
LH: loop header
LB: loop body
LE: loop exit
PB: predicated region body
PF: predicated region fallthrough
CT: control target
= control target key end

     0   :  { %s67_s10 = smov 56   ;;  %s68_s11 = smov 40   ;;  %vm3_vm0 = vcmask 64512   ;;  %vm9_vm1 = vcmask 523712   ;;  %vm15_vm2 = vcmask 458112   ;;  %vm21_vm3 = vcmask 392512   ;;  %s111_s0 = inlined_call_operand.vmem [shape: f32[8,8], index: 0, kind: input, shape index: {}]   ;;  %s112_s1 = inlined_call_operand.vmem [shape: f32[1,64], index: 1, kind: output, shape index: {}]  }
   0x1   :  { %v53_v0 = vld [vmem:[%s111_s0 + $0x7] sm:$0x1]   ;;  %v55_v1 = vld [vmem:[%s111_s0 + $0x5] sm:$0x1]   ;;  %v57_v2 = vld [vmem:[%s111_s0 + $0x3] sm:$0x1]  }
   0x2   :  { %7 = vrot.lane.b32.xlu0 %v53_v0, %s67_s10  ;;  %19 = vrot.lane.b32.xlu1 %v55_v1, %s68_s11  ;;  %s69_s14 = smov 24   ;;  %v54_v3 = vld [vmem:[%s111_s0 + $0x6] sm:$0x1]   ;;  %v56_v4 = vld [vmem:[%s111_s0 + $0x4] sm:$0x1]   ;;  %s70_s21 = smov 48  }
   0x3   :  { %31 = vrot.lane.b32.xlu2 %v57_v2, %s69_s14  ;;  %v58_v5 = vld [vmem:[%s111_s0 + $0x2] sm:$0x1]   ;;  %s71_s22 = smov 32   ;;  %s72_s23 = smov 16   ;;  %v59_v6 = vld [vmem:[%s111_s0 + $0x1] sm:$0x1]  }
   0x4   :  { %s73_s26 = smov 8   ;;  %v2_v7 = vld [vmem:[%s111_s0] sm:$0x1]   ;;  %vm27_vm4 = vcmask 326912   ;;  %vm33_vm5 = vcmask 261312   ;;  %vm39_vm6 = vcmask 195712  }
   0x5   :  { %4 = vst.msk [vmem:[#allocation0] sm:$0x1] %vm3_vm0, %v2_v7   ;;  %vm45_vm7 = vcmask 130112  }
   0xa   :  { %13 = vrot.lane.b32.xlu0 %v54_v3, %s70_s21  ;;  %25 = vrot.lane.b32.xlu1 %v56_v4, %s71_s22 }
   0xb   :  { %37 = vrot.lane.b32.xlu2 %v58_v5, %s72_s23 }
  0x12   :  { %43 = vrot.lane.b32.xlu0 %v59_v6, %s73_s26 }
  0x5d   :  { %v32_v8 = vpop.permute.xlu2 %31  }
  0x65   :  { %v38_v9 = vpop.permute.xlu2 %37  }
  0x74   :  { %v8_v10 = vpop.permute.xlu0 %7   ;;  %v20_v11 = vpop.permute.xlu1 %19  }
  0x75   :  { %10 = vst.msk [vmem:[#allocation0] sm:$0x1] %vm9_vm1, %v8_v10  }
  0x7c   :  { %v14_v12 = vpop.permute.xlu0 %13   ;;  %v26_v13 = vpop.permute.xlu1 %25  }
  0x7d   :  { %16 = vst.msk [vmem:[#allocation0] sm:$0x1] %vm15_vm2, %v14_v12  }
  0x7e   :  { %22 = vst.msk [vmem:[#allocation0] sm:$0x1] %vm21_vm3, %v20_v11  }
  0x7f   :  { %28 = vst.msk [vmem:[#allocation0] sm:$0x1] %vm27_vm4, %v26_v13  }
  0x80   :  { %34 = vst.msk [vmem:[#allocation0] sm:$0x1] %vm33_vm5, %v32_v8  }
  0x81   :  { %40 = vst.msk [vmem:[#allocation0] sm:$0x1] %vm39_vm6, %v38_v9  }
  0x84   :  { %v44_v14 = vpop.permute.xlu0 %43  }
  0x85   :  { %46 = vst.msk [vmem:[#allocation0] sm:$0x1] %vm45_vm7, %v44_v14  }
  0x8c   :  { %v49_v15 = vld [vmem:[#allocation0] sm:$0x1] }
  0x8d   :  { %52 = vst [vmem:[%s112_s1] sm:$0x1] %v49_v15 }

// kernel: attention_gate_forward.1
= control target key start
LH: loop header
LB: loop body
LE: loop exit
PB: predicated region body
PF: predicated region fallthrough
CT: control target
= control target key end

     0   :  { %s1128_s17 = smov 0   ;;  %s1263_s0 = inlined_call_operand.vmem [shape: bf16[2,8,128], index: 0, kind: input, shape index: {}]   ;;  %s1264_s1 = inlined_call_operand.vmem [shape: f32[2,16,128], index: 1, kind: input, shape index: {}]   ;;  %s1265_s2 = inlined_call_operand.vmem [shape: bf16[128,64], index: 2, kind: input, shape index: {}]   ;;  %s1266_s3 = inlined_call_operand.vmem [shape: f32[1,64], index: 3, kind: input, shape index: {}]   ;;  %s1267_s4 = inlined_call_operand.vmem [shape: bf16[16,8], index: 4, kind: input, shape index: {}]   ;;  %s1268_s5 = inlined_call_operand.vmem [shape: bf16[64,128], index: 5, kind: input, shape index: {}]   ;;  %s1269_s6 = inlined_call_operand.vmem [shape: bf16[128,128], index: 6, kind: input, shape index: {}]   ;;  %s1270_s7 = inlined_call_operand.vmem [shape: f32[1,128], index: 7, kind: input, shape index: {}]   ;;  %s1271_s8 = inlined_call_operand.vmem [shape: bf16[128,16], index: 8, kind: input, shape index: {}]   ;;  %s1272_s9 = inlined_call_operand.vmem [shape: f32[1,16], index: 9, kind: input, shape index: {}]   ;;  %s1273_s10 = inlined_call_operand.vmem [shape: bf16[16,128], index: 10, kind: input, shape index: {}]   ;;  %s1274_s11 = inlined_call_operand.vmem [shape: f32[2,16,128], index: 11, kind: output, shape index: {}]  }
   0x1 LB: > { %s874_s18 = sadd.s32 4294967295, %s1066_s17   ;;  %p878_p0 = scmp.ge.s32.totalorder %s1066_s17, 1  ;;  %s1066_s17 = sphi %s1128_s17, %s21_s17  }
   0x2   : > { %p346_p1 = scmp.lt.s32.totalorder %s1066_s17, 3 }
   0x4   : > { %p347_p2 = pnand %p878_p0, %p346_p1 }
   0x5   : > { %p390_p3 = scmp.lt.s32.totalorder (!%p347_p2), %s874_s18, 1 }
   0x6   : > { %350 = sbr.rel (%p347_p2) target bundleno = 770 (0x302), region = 64 }
   0xb   : > { %v1018_v0 = vld [vmem:[%s1265_s2 + $0x38] sm:$0xff]  ;;  %v1017_v1 = vld [vmem:[%s1265_s2 + $0x30] sm:$0xff]  ;;  %v1016_v2 = vld [vmem:[%s1265_s2 + $0x28] sm:$0xff]  ;;  %s1276_s18 = smov (!%p390_p3, %s874_s18), 1  ;;  %vm501_vm0 = vcmask 1043456   ;;  %vm497_vm1 = vcmask 64512  }
   0xc   : > { %476 = vmatpush.bf16.msra.mxu0 %v1018_v0  ;;  %v1015_v3 = vld [vmem:[%s1265_s2 + $0x20] sm:$0xff]  ;;  %v1014_v4 = vld [vmem:[%s1265_s2 + $0x18] sm:$0xff]  ;;  %v1013_v5 = vld [vmem:[%s1265_s2 + $0x10] sm:$0xff]  ;;  %s879_s14 = sshll.u32 %s1276_s18, 2  ;;  %s1009_s27 = sshll.u32 %s1276_s18, 4  ;;  %vm635_vm2 = vcmask 523264  }
   0xd   : > { %v1012_v6 = vld [vmem:[%s1265_s2 + $0x8] sm:$0xff]  ;;  %v1011_v7 = vld [vmem:[%s1265_s2] sm:$0xff]  ;;  %s393_s21 = scalar_lea.vmem %s1263_s0, %s879_s14  ;;  %v1031_v9 = vld [vmem:[%s1269_s6 + $0x38] sm:$0xff]  ;;  %s398_s30 = scalar_lea.vmem %s1264_s1, %s1009_s27  ;;  %vm785_vm11 = vcmask 130048  }
   0xe   : > { %v405_v8 = vld [vmem:[%s393_s21] sm:$0xf]  ;;  %597 = vmatpush.bf16.msra.mxu2 %v1031_v9  ;;  %v1030_v10 = vld [vmem:[%s1269_s6 + $0x30] sm:$0xff]  ;;  %v1023_v11 = vld [vmem:[%s1268_s5 + $0x18] sm:$0xff]  ;;  %s403_s29 = scalar_lea.vmem %s1274_s11, %s1009_s27 }
   0xf   : > { %643 = vmatpush.bf16.msra.mxu3 %v1023_v11  ;;  %v1029_v12 = vld [vmem:[%s1269_s6 + $0x28] sm:$0xff]  ;;  %v1028_v13 = vld [vmem:[%s1269_s6 + $0x20] sm:$0xff]  ;;  %v1027_v14 = vld [vmem:[%s1269_s6 + $0x18] sm:$0xff] }
  0x10   : > { %477 = vmatpush.bf16.msra.mxu0 %v1017_v1  ;;  %v1026_v15 = vld [vmem:[%s1269_s6 + $0x10] sm:$0xff]  ;;  %v1049_v16 = vld [vmem:[%s1266_s3] ss:$0 sm:$0xff]  ;;  %v1025_v17 = vld [vmem:[%s1269_s6 + $0x8] sm:$0xff] }
  0x11   : > { %v1024_v21 = vld [vmem:[%s1269_s6] sm:$0xff]  ;;  %v1022_v25 = vld [vmem:[%s1268_s5 + $0x10] sm:$0xff]  ;;  %v1210_v27 = vld [vmem:[%s398_s30 + $0x8] sm:$0xff] }
  0x12   : > { %598 = vmatpush.bf16.msra.mxu2 %v1030_v10  ;;  %v1019_v23 = vld [vmem:[%s1267_s4] sm:$0xff]  ;;  %v1021_v29 = vld [vmem:[%s1268_s5 + $0x8] sm:$0xff]  ;;  %v1039_v31 = vld [vmem:[%s1271_s8 + $0x38] sm:$0xff] }
  0x13   : > { %v1208_v26 = vld [vmem:[%s398_s30] sm:$0xff]  ;;  %644 = vmatpush.bf16.msra.mxu3 %v1022_v25  ;;  %v1038_v32 = vld [vmem:[%s1271_s8 + $0x30] sm:$0xff]  ;;  %v1037_v36 = vld [vmem:[%s1271_s8 + $0x28] sm:$0xff] }
  0x14   : > { %478 = vmatpush.bf16.msra.mxu0 %v1016_v2  ;;  %v528_v28 = vpack.c.bf16 %v1210_v27, %v1208_v26  ;;  %v1020_v30 = vld [vmem:[%s1268_s5] sm:$0xff]  ;;  %v1035_v38 = vld [vmem:[%s1271_s8 + $0x18] sm:$0xff]  ;;  %v1034_v39 = vld [vmem:[%s1271_s8 + $0x10] sm:$0xff] }
  0x15   : > { %v1036_v37 = vld [vmem:[%s1271_s8 + $0x20] sm:$0xff]  ;;  %v1033_v40 = vld [vmem:[%s1271_s8 + $0x8] sm:$0xff] }
  0x16   : > { %599 = vmatpush.bf16.msra.mxu2 %v1029_v12  ;;  %v1032_v41 = vld [vmem:[%s1271_s8] sm:$0xff] }
  0x17   : > { %645 = vmatpush.bf16.msra.mxu3 %v1021_v29  ;;  %v1050_v43 = vld [vmem:[%s1270_s7] ss:$0 sm:$0xff] }
  0x18   : > { %479 = vmatpush.bf16.msra.mxu0 %v1015_v3  ;;  %v1051_v54 = vld [vmem:[%s1272_s9] ss:$0 sm:$0xff] }
  0x19   : > { %v1040_v57 = vld [vmem:[%s1273_s10] sm:$0xff] }
  0x1a   : > { %600 = vmatpush.bf16.msra.mxu2 %v1028_v13 }
  0x1b   : > { %646 = vmatpush.bf16.msra.mxu3 %v1020_v30 }
  0x1c   : > { %480 = vmatpush.bf16.msra.mxu0 %v1014_v4 }
  0x1e   : > { %601 = vmatpush.bf16.msra.mxu2 %v1027_v14 }
  0x1f   : > { %796 = vmatpush.bf16.msrb.mxu3 %v1040_v57 }
  0x20   : > { %481 = vmatpush.bf16.msra.mxu0 %v1013_v5 }
  0x22   : > { %602 = vmatpush.bf16.msra.mxu2 %v1026_v15 }
  0x24   : > { %482 = vmatpush.bf16.msra.mxu0 %v1012_v6 }
  0x26   : > { %603 = vmatpush.bf16.msra.mxu2 %v1025_v17 }
  0x28   : > { %483 = vmatpush.bf16.msra.mxu0 %v1011_v7 }
  0x2a   : > { %604 = vmatpush.bf16.msra.mxu2 %v1024_v21 }
  0x2b   : > { %484 = vmatmul.bf16.vlgmr.msra.gmra.mxu0 %v405_v8 }
  0x2d   : > { %605 = vmatmul.bf16.vlgmr.msra.gmra.mxu2 %v528_v28 }
  0xa8   : > { %v485_v18 = vpop.f32.mrf.mxu0 }
  0xa9   : > { %v486_v19 = vadd.f32 %v1049_v16, %v485_v18 }
  0xab   : > { %v491_v20 = vpack.c.bf16 %v486_v19, %v486_v19 }
  0xad   : > { %v503_v22 = vsel %vm501_vm0, %v491_v20, 0 }
  0xae   : > { %512 = vmatpush.bf16.msra.mxu1 %v503_v22 }
  0xb0   : > { %v487_v24 = vpop.f32.mrf.mxu0  ;;  %v606_v42 = vpop.f32.mrf.mxu2 }
  0xb1   : > { %920 = vmatmul.msk.bf16.vlgmr.msra.gmra.mxu1 %vm497_vm1, %v1019_v23  ;;  %v607_v45 = vadd.f32 %v1050_v43, %v606_v42 }
  0xb2   : > { %724 = vmatpush.bf16.msrb.mxu1 %v1039_v31 }
  0xb6   : > { %725 = vmatpush.bf16.msrb.mxu1 %v1038_v32 }
  0xb8   : > { %v608_v46 = vpop.f32.mrf.mxu2 }
  0xb9   : > { %v609_v47 = vadd.f32 %v1050_v43, %v608_v46 }
  0xba   : > { %726 = vmatpush.bf16.msrb.mxu1 %v1037_v36 }
  0xbe   : > { %727 = vmatpush.bf16.msrb.mxu1 %v1036_v37 }
  0xc2   : > { %728 = vmatpush.bf16.msrb.mxu1 %v1035_v38 }
  0xc6   : > { %729 = vmatpush.bf16.msrb.mxu1 %v1034_v39 }
  0xca   : > { %730 = vmatpush.bf16.msrb.mxu1 %v1033_v40 }
  0xce   : > { %731 = vmatpush.bf16.msrb.mxu1 %v1032_v41 }
 0x12e   : > { %v514_v33 = vpop.f32.mrf.mxu1 }
 0x136   : > { %v516_v34 = vpop.f32.mrf.mxu1 }
 0x137   : > { %v519_v35 = vpack.c.bf16 %v516_v34, %v514_v33 }
 0x139   : > { %969 = vmatmul.msk.bf16.vlgmr.msra.gmra.mxu3 %vm635_vm2, %v519_v35 }
 0x1bc   : > { %v648_v44 = vpop.f32.mrf.mxu3 }
 0x1bd   : > { %v649_v48 = vadd.f32 %v648_v44, %v607_v45 }
 0x1bf   : > { %v653_v51 = vmax.f32 %v649_v48, 0.0 }
 0x1c4   : > { %v650_v49 = vpop.f32.mrf.mxu3 }
 0x1c5   : > { %v651_v50 = vadd.f32 %v650_v49, %v609_v47 }
 0x1c7   : > { %v654_v52 = vmax.f32 %v651_v50, 0.0 }
 0x1c9   : > { %v655_v53 = vpack.c.bf16 %v654_v52, %v653_v51 }
 0x1cb   : > { %732 = vmatmul.bf16.vlgmr.msrb.gmra.mxu1 %v655_v53 }
 0x248   : > { %v733_v55 = vpop.f32.mrf.mxu1 }
 0x249   : > { %v734_v56 = vadd.f32 %v1051_v54, %v733_v55 }
 0x24b   : > { %v738_v58 = vsub.f32 0.0, %v734_v56 }
 0x24d   : > { %v740_v59 = vmul.f32 1.442695, %v738_v58 }
 0x24f   : > { %1052 = vpow2.f32 %v740_v59 }
 0x250   : > { %v735_v60 = vpop.f32.mrf.mxu1 }
 0x251   : > { %v736_v61 = vadd.f32 %v1051_v54, %v735_v60 }
 0x253   : > { %v739_v62 = vsub.f32 0.0, %v736_v61 }
 0x255   : > { %v1053_v63 = vpop.eup %1052  ;;  %v742_v0 = vmul.f32 1.442695, %v739_v62 }
 0x256   : > { %v744_v1 = vadd.f32 1.0, %v1053_v63 }
 0x257   : > { %1054 = vpow2.f32 %v742_v0 }
 0x258   : > { %1056 = vrcp.f32 %v744_v1  ;;  %vm751_vm4 = vweird.f32 %v744_v1  ;;  %v757_v12 = vand.u32 2147483648, %v744_v1  ;;  %v755_v14 = vand.u32 2147483647, %v744_v1 }
 0x25a   : > { %v758_v19 = vor.u32 1.1754944e-38, %v757_v12  ;;  %vm756_vm9 = vcmp.eq.f32.partialorder %v755_v14, 8.507059e+37 }
 0x25d   : > { %v1055_v2 = vpop.eup %1054 }
 0x25e   : > { %v1057_v3 = vpop.eup %1056  ;;  %v745_v4 = vadd.f32 1.0, %v1055_v2 }
 0x25f   : > { %v747_v5 = vmul.f32 %v1057_v3, %v744_v1  ;;  %vm752_vm3 = vweird.f32 %v1057_v3 }
 0x260   : > { %1058 = vrcp.f32 %v745_v4  ;;  %v772_v13 = vand.u32 2147483648, %v745_v4  ;;  %v770_v16 = vand.u32 2147483647, %v745_v4  ;;  %vm753_vm6 = vmor %vm751_vm4, %vm752_vm3  ;;  %vm766_vm7 = vweird.f32 %v745_v4 }
 0x261   : > { %v748_v6 = vsub.f32 1.0, %v747_v5 }
 0x262   : > { %v773_v20 = vor.u32 1.1754944e-38, %v772_v13  ;;  %vm771_vm10 = vcmp.eq.f32.partialorder %v770_v16, 8.507059e+37 }
 0x263   : > { %v749_v7 = vmul.f32 %v1057_v3, %v748_v6 }
 0x265   : > { %v750_v11 = vadd.f32 %v1057_v3, %v749_v7 }
 0x266   : > { %v1059_v8 = vpop.eup %1058 }
 0x267   : > { %v762_v9 = vmul.f32 %v1059_v8, %v745_v4  ;;  %vm767_vm5 = vweird.f32 %v1059_v8  ;;  %v754_v17 = vsel %vm753_vm6, %v1057_v3, %v750_v11 }
 0x268   : > { %vm768_vm8 = vmor %vm766_vm7, %vm767_vm5  ;;  %v759_v22 = vsel %vm756_vm9, %v758_v19, %v754_v17 }
 0x269   : > { %v763_v10 = vsub.f32 1.0, %v762_v9 }
 0x26b   : > { %v764_v15 = vmul.f32 %v1059_v8, %v763_v10 }
 0x26d   : > { %v765_v18 = vadd.f32 %v1059_v8, %v764_v15 }
 0x26f   : > { %v769_v21 = vsel %vm768_vm8, %v1059_v8, %v765_v18 }
 0x270   : > { %v774_v23 = vsel %vm771_vm10, %v773_v20, %v769_v21 }
 0x271   : > { %v776_v24 = vpack.c.bf16 %v774_v23, %v759_v22 }
 0x273   : > { %1006 = vmatmul.msk.bf16.vlgmr.msrb.gmra.mxu3 %vm785_vm11, %v776_v24 }
 0x2f6   : > { %v798_v25 = vpop.f32.mrf.mxu3 }
 0x2f7   : > { %v803_v28 = vmul.f32 %v798_v25, %v1208_v26 }
 0x2f9   : > { %805 = vst [vmem:[%s403_s29] sm:$0xff] %v803_v28 }
 0x2fe   : > { %v800_v29 = vpop.f32.mrf.mxu3 }
 0x2ff   : > { %v804_v30 = vmul.f32 %v800_v29, %v1210_v27 }
 0x301   : > { %806 = vst [vmem:[%s403_s29 + $0x8] sm:$0xff] %v804_v30 }
 0x302 PF: > { %s21_s17 = sadd.s32 1, %s1066_s17  }
 0x303   : > { %p18_p4 = scmp.ge.s32.totalorder %s21_s17, 4  }
 0x305   :  { %20 = sbr.rel (!%p18_p4) target bundleno = 1 (0x1), region = 97 }

</bundles_post_ra>
